<compile_context>
chip_gen: v7x
topology: tpu7x:2x2x1
jax: 0.10.0
libtpu: 0.0.40
codegen_flags: <defaults>
</compile_context>

<pallas_src>
import jax
import jax.numpy as jnp
from jax.experimental import pallas as pl
from jax.experimental.pallas import tpu as pltpu


def tanh_attention_kernel(x_ref, mask_ref, w1_ref, b1_ref, w2_ref,
                          wf_ref, bf_ref, out_ref):
    """One batch tile of TanhAttention.

    x_ref    : (TB, T, H)   activations tile
    mask_ref : (TB, T)      additive mask (0 valid, -1e9 pad)
    w1_ref   : (H, K)       attn1.weight^T   (K = H // 2)
    b1_ref   : (1, K)       attn1.bias
    w2_ref   : (1, K)       attn2.weight
    wf_ref   : (H, O)       fc.weight^T
    bf_ref   : (1, O)       fc.bias
    out_ref  : (TB, O)
    """
    x = x_ref[...]
    mask = mask_ref[...]
    w1 = w1_ref[...]
    b1 = b1_ref[...]
    w2 = w2_ref[...]
    wf = wf_ref[...]
    bf = bf_ref[...]

    tb, t, h = x.shape

    # ---- attn1 = tanh(x @ W1^T + b1) --------------------------------------
    if t % 8 == 0:
        # Collapse (TB, T) into one tall-M MXU matmul; the reshape is a free
        # view because T is a multiple of the 8-sublane tile.
        a1 = jnp.tanh(
            jnp.dot(x.reshape(tb * t, h), w1,
                    preferred_element_type=jnp.float32) + b1
        ).reshape(tb, t, -1)                                          # (TB, T, K)
    else:
        # TODO(synk): pad T to a multiple of 8 in the wrapper to recover the
        # tall-M path; for now use a batched contraction to avoid a relayout.
        a1 = jnp.tanh(
            jax.lax.dot_general(x, w1, (((2,), (0,)), ((), ())),
                                preferred_element_type=jnp.float32) + b1
        )                                                             # (TB, T, K)

    # ---- attn2 = attn1 @ W2^T, squeeze(-1): lane reduce on the XLU --------
    scores = jnp.sum(a1 * w2, axis=-1)                                # (TB, T)

    # ---- masked softmax over T (kept unnormalized) -------------------------
    s = scores + mask
    s_max = jnp.max(s, axis=1, keepdims=True)
    e = jnp.exp(s - s_max)                                            # (TB, T)
    denom = jnp.sum(e, axis=1, keepdims=True)                         # (TB, 1)

    # ---- attention pooling: h[b, :] = sum_t e[b, t] * x[b, t, :] -----------
    if t < 128:
        # VPU broadcast-multiply + XLU sublane reduce over T; avoids TB
        # separate M=1 MXU matmuls (MRF pops, relayouts) for small T.
        h_un = jnp.sum(e[:, :, None] * x, axis=1)                     # (TB, H)
    else:
        h_un = jnp.einsum('bt,bth->bh', e, x,
                          preferred_element_type=jnp.float32)         # (TB, H)

    # Exact normalization — approx=True reciprocal breaks 1e-3 parity with
    # the PyTorch reference, and this divide is only (TB, 1) elements.
    hpool = h_un / denom                                              # (TB, H)

    # TODO(synk): nn.Dropout(p=0.5) is identity in eval mode; not applied here.
    # TODO(synk): for very long sequences, add a second "arbitrary" grid axis
    # over T with flash-style running max/sum/accumulator scratch.

    # ---- y_hat = fc(h) ------------------------------------------------------
    y = jnp.dot(hpool, wf, preferred_element_type=jnp.float32) + bf   # (TB, O)
    out_ref[...] = y.astype(out_ref.dtype)


def _vmem_capacity_bytes():
    # Physical VMEM per TensorCore: 128 MiB on v5e/v6e, 64 MiB on v7x.
    try:
        return int(pltpu.get_tpu_info().vmem_capacity_bytes)
    except Exception:
        return 64 << 20   # conservative fallback (v7x per-TC / interpret mode)


def tanh_attention(x, mask, w1, b1, w2, wf, bf, *, batch_tile=None):
    B, T, H = x.shape
    K = w1.shape[1]
    O = wf.shape[1]
    itemsize = jnp.dtype(x.dtype).itemsize

    vmem_cap = _vmem_capacity_bytes()
    # Target ~20% of physical VMEM for one x tile (~25 MiB on v5e/v6e,
    # ~13 MiB on v7x); with 2x double-buffering + weights this stays < ~60%.
    x_tile_budget = max(vmem_cap // 5, 4 << 20)

    # ---- pick the batch tile ------------------------------------------------
    # Sublane constraint (mask/out blocks): tb must be a multiple of 8 or == B.
    if batch_tile is None:
        if B <= 8 or B % 8 != 0:
            batch_tile = B
        else:
            row_bytes = max(T * H * itemsize, 1)
            budget_rows = max(8, x_tile_budget // row_bytes)
            candidates = [m for m in range(8, B + 1, 8)
                          if B % m == 0 and m <= budget_rows]
            if B >= 16:
                # Prefer >= 2 grid steps so the "parallel" batch axis can be
                # sharded across v7x's two TensorCores.
                proper = [m for m in candidates if m < B]
                if proper:
                    candidates = proper
            batch_tile = max(candidates) if candidates else B
    tb = batch_tile
    assert B % tb == 0, (B, tb)
    grid = (B // tb,)

    # Weights/biases: whole-array blocks with constant index maps -> DMA'd
    # once and VMEM-resident across the batch grid.
    def const2d(shape):
        return pl.BlockSpec(shape, lambda b: (0, 0))

    in_specs = [
        pl.BlockSpec((tb, T, H), lambda b: (b, 0, 0)),   # x, tiled over batch
        pl.BlockSpec((tb, T), lambda b: (b, 0)),         # additive mask
        const2d((H, K)),                                 # w1
        const2d((1, K)),                                 # b1
        const2d((1, K)),                                 # w2
        const2d((H, O)),                                 # wf
        const2d((1, O)),                                 # bf
    ]
    out_specs = pl.BlockSpec((tb, O), lambda b: (b, 0))

    # VMEM request: double-buffered x/mask/out tiles + weights + headroom,
    # clamped to the chip's physical VMEM (v7x-safe).
    tile_bytes = tb * T * H * itemsize
    small_bytes = (tb * T + tb * O) * itemsize
    weight_bytes = itemsize * (H * K + 2 * K + H * O + O)
    needed = 2 * (tile_bytes + small_bytes) + weight_bytes + (4 << 20)
    vmem_limit = int(min(max(needed, 16 << 20), int(0.85 * vmem_cap)))

    cost = pl.CostEstimate(
        flops=2 * B * T * H * K + 2 * B * T * K + 2 * B * T * H + 2 * B * H * O,
        transcendentals=B * T * K + B * T,
        bytes_accessed=itemsize * (B * T * H + B * T + B * O
                                   + H * K + 2 * K + H * O + O),
    )

    return pl.pallas_call(
        tanh_attention_kernel,
        out_shape=jax.ShapeDtypeStruct((B, O), jnp.float32),
        grid=grid,
        in_specs=in_specs,
        out_specs=out_specs,
        compiler_params=pltpu.CompilerParams(
            dimension_semantics=("parallel",),
            vmem_limit_bytes=vmem_limit,
        ),
        cost_estimate=cost,
    )(x, mask, w1, b1, w2, wf, bf)


def tanh_attention_ref(x, mask, w1, b1, w2, wf, bf):
    a1 = jnp.tanh(jnp.einsum('bth,hk->btk', x, w1) + b1)
    scores = jnp.einsum('btk,k->bt', a1, w2[0])
    attn = jax.nn.softmax(scores + mask, axis=1)
    h = jnp.einsum('bth,bt->bh', x, attn)
    return jnp.dot(h, wf) + bf


if __name__ == "__main__":
    B, T, H, O = 16, 8, 32, 2
    K = H // 2

    key = jax.random.PRNGKey(0)
    kx, k1, kb1, k2, kf, kbf, kl = jax.random.split(key, 7)

    x = jax.random.normal(kx, (B, T, H), dtype=jnp.float32)

    # Additive mask: 0 for valid positions, -1e9 for padded positions.
    lengths = jax.random.randint(kl, (B,), 1, T + 1)
    pos = jnp.arange(T)[None, :]
    mask = jnp.where(pos < lengths[:, None], 0.0, -1e9).astype(jnp.float32)

    # Deterministic parameters (shapes follow the nn.Module __init__;
    # linear weights are stored pre-transposed vs. torch).
    w1 = jax.random.normal(k1, (H, K), dtype=jnp.float32) * 0.1   # attn1.weight^T
    b1 = jax.random.normal(kb1, (1, K), dtype=jnp.float32) * 0.1  # attn1.bias
    w2 = jax.random.normal(k2, (1, K), dtype=jnp.float32) * 0.1   # attn2.weight
    wf = jax.random.normal(kf, (H, O), dtype=jnp.float32) * 0.1   # fc.weight^T
    bf = jax.random.normal(kbf, (1, O), dtype=jnp.float32) * 0.1  # fc.bias

    # batch_tile=8 -> grid of 2 steps, exercising the pipelined batch grid.
    y = tanh_attention(x, mask, w1, b1, w2, wf, bf, batch_tile=8)
    jax.block_until_ready(y)

    y_ref = tanh_attention_ref(x, mask, w1, b1, w2, wf, bf)
    assert jnp.allclose(y, y_ref, atol=1e-3, rtol=1e-3), (y, y_ref)

    print("KERNEL_OK")
</pallas_src>

<mosaic_0001>
module attributes {stable_mosaic.version = 11 : i64} {
  func.func @tanh_attention_kernel(%arg0: i32, %arg1: memref<8x8x32xf32, #tpu.memory_space<vmem>>, %arg2: memref<8x8xf32, #tpu.memory_space<vmem>>, %arg3: memref<32x16xf32, #tpu.memory_space<vmem>>, %arg4: memref<1x16xf32, #tpu.memory_space<vmem>>, %arg5: memref<1x16xf32, #tpu.memory_space<vmem>>, %arg6: memref<32x2xf32, #tpu.memory_space<vmem>>, %arg7: memref<1x2xf32, #tpu.memory_space<vmem>>, %arg8: memref<8x2xf32, #tpu.memory_space<vmem>>) attributes {dimension_semantics = [#tpu.dimension_semantics<parallel>], iteration_bounds = array<i64: 2>, scalar_prefetch = 0 : i64, scratch_operands = 0 : i64, tpu.core_type = #tpu.core_type<tc>, window_params = [{transform_indices = @transform_0, window_bounds = array<i64: 8, 8, 32>}, {transform_indices = @transform_1, window_bounds = array<i64: 8, 8>}, {pipeline_mode = #tpu.pipeline_mode<synchronous>, transform_indices = @transform_2, window_bounds = array<i64: 32, 16>}, {pipeline_mode = #tpu.pipeline_mode<synchronous>, transform_indices = @transform_3, window_bounds = array<i64: 1, 16>}, {pipeline_mode = #tpu.pipeline_mode<synchronous>, transform_indices = @transform_4, window_bounds = array<i64: 1, 16>}, {pipeline_mode = #tpu.pipeline_mode<synchronous>, transform_indices = @transform_5, window_bounds = array<i64: 32, 2>}, {pipeline_mode = #tpu.pipeline_mode<synchronous>, transform_indices = @transform_6, window_bounds = array<i64: 1, 2>}, {transform_indices = @transform_7, window_bounds = array<i64: 8, 2>}]} {
    %c0 = arith.constant 0 : index
    %c0_0 = arith.constant 0 : index
    %c0_1 = arith.constant 0 : index
    %0 = vector.load %arg1[%c0, %c0_0, %c0_1] : memref<8x8x32xf32, #tpu.memory_space<vmem>>, vector<8x8x32xf32>
    %c0_2 = arith.constant 0 : index
    %c0_3 = arith.constant 0 : index
    %1 = vector.load %arg2[%c0_2, %c0_3] : memref<8x8xf32, #tpu.memory_space<vmem>>, vector<8x8xf32>
    %c0_4 = arith.constant 0 : index
    %c0_5 = arith.constant 0 : index
    %2 = vector.load %arg3[%c0_4, %c0_5] : memref<32x16xf32, #tpu.memory_space<vmem>>, vector<32x16xf32>
    %c0_6 = arith.constant 0 : index
    %c0_7 = arith.constant 0 : index
    %3 = vector.load %arg4[%c0_6, %c0_7] : memref<1x16xf32, #tpu.memory_space<vmem>>, vector<1x16xf32>
    %c0_8 = arith.constant 0 : index
    %c0_9 = arith.constant 0 : index
    %4 = vector.load %arg5[%c0_8, %c0_9] : memref<1x16xf32, #tpu.memory_space<vmem>>, vector<1x16xf32>
    %c0_10 = arith.constant 0 : index
    %c0_11 = arith.constant 0 : index
    %5 = vector.load %arg6[%c0_10, %c0_11] : memref<32x2xf32, #tpu.memory_space<vmem>>, vector<32x2xf32>
    %c0_12 = arith.constant 0 : index
    %c0_13 = arith.constant 0 : index
    %6 = vector.load %arg7[%c0_12, %c0_13] : memref<1x2xf32, #tpu.memory_space<vmem>>, vector<1x2xf32>
    %7 = vector.shape_cast %0 : vector<8x8x32xf32> to vector<64x32xf32>
    %cst = arith.constant dense<0.000000e+00> : vector<64x16xf32>
    %8 = tpu.matmul %7, %2, %cst {dimension_numbers = #tpu.dot_dimension_numbers<[1], [0], [0], [1], [0, 0, 1, 1], [], []>} : vector<64x32xf32>, vector<32x16xf32>, vector<64x16xf32> -> vector<64x16xf32>
    %9 = vector.broadcast %3 : vector<1x16xf32> to vector<64x16xf32>
    %10 = arith.addf %8, %9 : vector<64x16xf32>
    %11 = math.tanh %10 : vector<64x16xf32>
    %12 = vector.shape_cast %11 : vector<64x16xf32> to vector<8x8x16xf32>
    %13 = vector.shape_cast %4 : vector<1x16xf32> to vector<1x1x16xf32>
    %14 = vector.broadcast %13 : vector<1x1x16xf32> to vector<8x8x16xf32>
    %15 = arith.mulf %12, %14 : vector<8x8x16xf32>
    %cst_14 = arith.constant dense<0.000000e+00> : vector<8x8xf32>
    %16 = vector.multi_reduction <add>, %15, %cst_14 [2] : vector<8x8x16xf32> to vector<8x8xf32>
    %17 = arith.addf %16, %1 : vector<8x8xf32>
    %cst_15 = arith.constant dense<0xFF800000> : vector<8xf32>
    %18 = vector.multi_reduction <maximumf>, %17, %cst_15 [1] : vector<8x8xf32> to vector<8xf32>
    %19 = vector.shape_cast %18 : vector<8xf32> to vector<8x1xf32>
    %20 = vector.broadcast %19 : vector<8x1xf32> to vector<8x8xf32>
    %21 = arith.subf %17, %20 : vector<8x8xf32>
    %22 = math.exp %21 : vector<8x8xf32>
    %cst_16 = arith.constant dense<0.000000e+00> : vector<8xf32>
    %23 = vector.multi_reduction <add>, %22, %cst_16 [1] : vector<8x8xf32> to vector<8xf32>
    %24 = vector.shape_cast %23 : vector<8xf32> to vector<8x1xf32>
    %25 = vector.shape_cast %22 : vector<8x8xf32> to vector<8x8x1xf32>
    %26 = vector.broadcast %25 : vector<8x8x1xf32> to vector<8x8x32xf32>
    %27 = arith.mulf %26, %0 : vector<8x8x32xf32>
    %cst_17 = arith.constant dense<0.000000e+00> : vector<8x32xf32>
    %28 = vector.multi_reduction <add>, %27, %cst_17 [1] : vector<8x8x32xf32> to vector<8x32xf32>
    %29 = vector.broadcast %24 : vector<8x1xf32> to vector<8x32xf32>
    %30 = arith.divf %28, %29 : vector<8x32xf32>
    %cst_18 = arith.constant dense<0.000000e+00> : vector<8x2xf32>
    %31 = tpu.matmul %30, %5, %cst_18 {dimension_numbers = #tpu.dot_dimension_numbers<[1], [0], [0], [1], [0, 0, 1, 1], [], []>} : vector<8x32xf32>, vector<32x2xf32>, vector<8x2xf32> -> vector<8x2xf32>
    %32 = vector.broadcast %6 : vector<1x2xf32> to vector<8x2xf32>
    %33 = arith.addf %31, %32 : vector<8x2xf32>
    %c0_19 = arith.constant 0 : index
    %c0_20 = arith.constant 0 : index
    %34 = vector.load %arg8[%c0_19, %c0_20] : memref<8x2xf32, #tpu.memory_space<vmem>>, vector<8x2xf32>
    tpu.vector_store %arg8[%c0_19, %c0_20], %33 {strides = array<i32>} : memref<8x2xf32, #tpu.memory_space<vmem>>, vector<8x2xf32>,
    return
  }
  func.func @transform_0(%arg0: i32) -> (i32, i32, i32) {
    %c0_i32 = arith.constant 0 : i32
    %c0_i32_0 = arith.constant 0 : i32
    %c0_i32_1 = arith.constant 0 : i32
    return %arg0, %c0_i32, %c0_i32_0 : i32, i32, i32
  }
  func.func @transform_1(%arg0: i32) -> (i32, i32) {
    %c0_i32 = arith.constant 0 : i32
    %c0_i32_0 = arith.constant 0 : i32
    return %arg0, %c0_i32 : i32, i32
  }
  func.func @transform_2(%arg0: i32) -> (i32, i32) {
    %c0_i32 = arith.constant 0 : i32
    %c0_i32_0 = arith.constant 0 : i32
    %c0_i32_1 = arith.constant 0 : i32
    return %c0_i32, %c0_i32_0 : i32, i32
  }
  func.func @transform_3(%arg0: i32) -> (i32, i32) {
    %c0_i32 = arith.constant 0 : i32
    %c0_i32_0 = arith.constant 0 : i32
    %c0_i32_1 = arith.constant 0 : i32
    return %c0_i32, %c0_i32_0 : i32, i32
  }
  func.func @transform_4(%arg0: i32) -> (i32, i32) {
    %c0_i32 = arith.constant 0 : i32
    %c0_i32_0 = arith.constant 0 : i32
    %c0_i32_1 = arith.constant 0 : i32
    return %c0_i32, %c0_i32_0 : i32, i32
  }
  func.func @transform_5(%arg0: i32) -> (i32, i32) {
    %c0_i32 = arith.constant 0 : i32
    %c0_i32_0 = arith.constant 0 : i32
    %c0_i32_1 = arith.constant 0 : i32
    return %c0_i32, %c0_i32_0 : i32, i32
  }
  func.func @transform_6(%arg0: i32) -> (i32, i32) {
    %c0_i32 = arith.constant 0 : i32
    %c0_i32_0 = arith.constant 0 : i32
    %c0_i32_1 = arith.constant 0 : i32
    return %c0_i32, %c0_i32_0 : i32, i32
  }
  func.func @transform_7(%arg0: i32) -> (i32, i32) {
    %c0_i32 = arith.constant 0 : i32
    %c0_i32_0 = arith.constant 0 : i32
    return %arg0, %c0_i32 : i32, i32
  }
}

</mosaic_0001>

<bundles_post_ra>
// kernel: tpu_custom_call.1
= control target key start
LH: loop header
LB: loop body
LE: loop exit
PB: predicated region body
PF: predicated region fallthrough
CT: control target
= control target key end

     0   :  { %12 = vsyncpa [#allocation3], 0  ;;  %s1736_s0 = inlined_call_operand.hbm [shape: f32[16,8,32], index: 0, kind: input, shape index: {}]   ;;  %s1737_s1 = inlined_call_operand.vmem [shape: f32[16,8], index: 1, kind: input, shape index: {}]   ;;  %s1738_s2 = inlined_call_operand.vmem [shape: f32[32,16], index: 2, kind: input, shape index: {}]   ;;  %s1739_s3 = inlined_call_operand.vmem [shape: f32[1,16], index: 3, kind: input, shape index: {}]   ;;  %s1740_s4 = inlined_call_operand.vmem [shape: f32[1,16], index: 4, kind: input, shape index: {}]   ;;  %s1741_s5 = inlined_call_operand.vmem [shape: f32[32,2], index: 5, kind: input, shape index: {}]   ;;  %s1742_s6 = inlined_call_operand.vmem [shape: f32[1,2], index: 6, kind: input, shape index: {}]   ;;  %s1743_s7 = inlined_call_operand.vmem [shape: f32[16,2], index: 7, kind: output, shape index: {}]  }
   0x1   :  { %14 = vsyncpa [#allocation3 + $0x1], 0  ;;  %s1394_s24 = smov 0   ;;  %s1396_s25 = smov 0  }
   0x2   :  { %s1398_s26 = smov 0   ;;  %s1400_s27 = smov 0  }
   0x3 LB: > { %s1413_s28 = sadd.s32 4294967295, %s1345_s27   ;;  %s1416_s29 = sadd.s32 1, %s1345_s27   ;;  %s1345_s27 = sphi %s1400_s27, %s1750_s27   ;;  %s1341_s26 = sphi %s1398_s26, %s1749_s26   ;;  %s1337_s25 = sphi %s1396_s25, %s1748_s25   ;;  %s1333_s24 = sphi %s1394_s24, %s1747_s24  }
   0x4   : > { %s24_s30 = ssub.s32 %s1345_s27, %s1416_s29  ;;  %s27_s8 = sadd.s32 1, %s1341_s26 }
   0x5   : > { %p25_p0 = scmp.eq.s32.totalorder %s24_s30, 0  ;;  %p34_p1 = scmp.ne.s32.totalorder %s1341_s26, %s1337_s25 }
   0x6   : > { %p35_p2 = scmp.eq.s32.totalorder %s1345_s27, 0  ;;  %p40_p3 = scmp.ne.s32.totalorder %s1337_s25, %s1333_s24 }
   0x7   : > { %s1426_s9 = scalar_select %p25_p0, %s1341_s26, %s27_s8  }
   0x8   : > { %p36_p4 = por %p35_p2, %p34_p1  ;;  %p41_p5 = scmp.eq.s32.totalorder %s1413_s28, 0 }
   0x9   : > { %p1192_p6 = scmp.lt.s32.totalorder %s1345_s27, 2  ;;  %s236_s11 = sand.u32 1, %s1341_s26  }
   0xa   : > { %p1430_p7 = por %p41_p5, %p40_p3  ;;  %s1102_s12 = sshll.u32 %s236_s11, 6 }
   0xb   : > { %s1123_s13 = sshll.u32 %s1345_s27, 10  ;;  %s240_s17 = scalar_lea.vmem [#allocation2], %s1102_s12 }
   0xc   : > { %s1439_s16 = scalar_lea.hbm %s1736_s0, %s1123_s13  ;;  %s247_s18 = sshll.u32 %s240_s17, 4  ;;  %s1441_s18 = int_to_ptr.vmem [resolvable:$true] %s247_s18 }
   0xd   : > { %p1443_p8 = pnand %p1192_p6, %p36_p4  ;;  %s1448_s20 = scalar_lea.sflag [#allocation3], %s236_s11 }
   0xe   : > { %s1281_s21 = scalar_lea.hbm %s1439_s16, 1024  ;;  %s1286_s24 = scalar_lea.hbm %s1736_s0, 2048 }
   0xf   : > { %p1282_p10 = scmp.ne.s32.totalorder %s1439_s16, %s1281_s21  ;;  %p1283_p11 = pneg %p1443_p8 }
  0x10   : > { %p1287_p0 = scmp.lt.u32.totalorder %s1439_s16, %s1736_s0  ;;  %p1288_p1 = scmp.lt.u32.totalorder %s1286_s24, %s1281_s21 }
  0x11   : > { %p1284_p12 = pnand %p1283_p11, %p1282_p10  ;;  %p1290_p3 = scmp.lt.u32.totalorder %s1281_s21, %s1439_s16 }
  0x12   : > { %p1289_p2 = por %p1288_p1, %p1287_p0 }
  0x13   : > { %p1285_p13 = pneg %p1284_p12 }
  0x14   : > { %p1291_p4 = por %p1290_p3, %p1289_p2 }
  0x16   : > { %p1292_p5 = pnand %p1291_p4, %p1285_p13 }
  0x18   : > { %1295 = shalt.err (!%p1292_p5)
}
  0x19   : > { %s1296_s11 = scalar_lea.vmem %s1441_s18, 1024  ;;  %s1347_s12 = smov [#allocation2]  }
  0x1a   : > { %p1297_p6 = scmp.ne.s32.totalorder %s1441_s18, %s1296_s11  ;;  %s1301_s13 = sshll.u32 %s1347_s12, 4  ;;  %s1302_s13 = int_to_ptr.vmem [resolvable:$false] %s1301_s13 }
  0x1b   : > { %s1303_s14 = scalar_lea.vmem %s1302_s13, 2048  ;;  %p1304_p9 = scmp.lt.s32.totalorder %s1441_s18, %s1302_s13 }
  0x1c   : > { %p1299_p10 = pnand %p1297_p6, %p1283_p11  ;;  %p1305_p0 = scmp.lt.s32.totalorder %s1303_s14, %s1296_s11 }
  0x1e   : > { %p1300_p12 = pneg %p1299_p10  ;;  %p1306_p1 = por %p1305_p0, %p1304_p9 }
  0x20   : > { %p1307_p2 = pnand %p1306_p1, %p1300_p12 }
  0x22   : > { %1310 = shalt.err (!%p1307_p2)
}
  0x23   : > { %s1348_s15 = smov 128   ;;  %s1349_s17 = smov 8  }
  0x24   : > { %1191 = dma.hbm_to_vmem [thread:$0]  (!%p1443_p8), %s1439_s16, 1024, %s1441_s18, %s1448_s20, %s1348_s15, %s1348_s15, %s1349_s17  }
  0x25   : > { %p262_p11 = scmp.lt.s32.totalorder %s1345_s27, 3  ;;  %p1746_p13 = scmp.ge.s32.totalorder %s1345_s27, 1 }
  0x27   : > { %p263_p3 = pnand %p1746_p13, %p262_p11 }
  0x28   : > { %s268_s21 = sand.u32 (!%p263_p3), 1, %s1337_s25  }
  0x29   : > { %266 = sbr.rel (%p263_p3) target bundleno = 1285 (0x505), region = 48  ;;  %s1106_s22 = sshll.u32 (!%p263_p3), %s268_s21, 6 }
  0x2a   : > { %s269_s23 = scalar_lea.sflag (!%p263_p3), [#allocation3], %s268_s21  ;;  %s1480_s24 = scalar_lea.vmem (!%p263_p3), [#allocation2], %s1106_s22 }
  0x30   : > { %1328 = dma.done.wait (%p1430_p7), %s269_s23, 1024  }
  0x31   : > { %1330 = vsyncadd (%p1430_p7), %s269_s23, 4294966272  ;;  %p307_p8 = scmp.lt.s32.totalorder %s1413_s28, 1  ;;  %v519_v0 = vlaneseq  ;;  %vm341_vm0 = vcmask 261120   ;;  %v324_v2 = vld [vmem:[%s1738_s2] sm:$0xff]  ;;  %v325_v3 = vld [vmem:[%s1738_s2 + $0x8] sm:$0xff]  ;;  %vm493_vm1 = vcmask 130048  }
  0x32   : > { %v326_v4 = vld [vmem:[%s1738_s2 + $0x10] sm:$0xff]  ;;  %v1172_v5 = vpack.c.bf16 %v325_v3, %v324_v2  ;;  %v327_v6 = vld [vmem:[%s1738_s2 + $0x18] sm:$0xff]  ;;  %v1507_v7 = vld [vmem:[%s1480_s24] sm:$0xff]  ;;  %vm657_vm2 = vcmask 1041409   ;;  %vm659_vm3 = vcmask 1042434   ;;  %vm661_vm4 = vcmask 1043459  }
  0x33   : > { %s1752_s28 = smov (!%p307_p8, %s1413_s28), 1  ;;  %v1491_v1 = vshrl.u32 %v519_v0, 7  ;;  %v1176_v10 = vpack.c.bf16 %v327_v6, %v326_v4  ;;  %1149 = vmatprep.mubr.msk.f32.mxu0 %vm341_vm0, %v1507_v7  ;;  %v1533_v18 = vld [vmem:[%s1480_s24 + $0x8] sm:$0xff]  ;;  %v1539_v20 = vld [vmem:[%s1480_s24 + $0x10] sm:$0xff]  ;;  %v1550_v23 = vld [vmem:[%s1480_s24 + $0x18] sm:$0xff]  ;;  %vm663_vm5 = vcmask 1044484  }
  0x34   : > { %s1107_s27 = sshll.u32 %s1752_s28, 3  ;;  %1173 = vmatprep.subr.bf16.mxu0 %v1172_v5  ;;  %v1553_v24 = vld [vmem:[%s1480_s24 + $0x20] sm:$0xff]  ;;  %v1563_v26 = vld [vmem:[%s1480_s24 + $0x28] sm:$0xff]  ;;  %v1566_v27 = vld [vmem:[%s1480_s24 + $0x30] sm:$0xff]  ;;  %vm665_vm6 = vcmask 1045509   ;;  %vm667_vm7 = vcmask 1046534  }
  0x35   : > { %s310_s14 = scalar_lea.vmem %s1737_s1, %s1107_s27  ;;  %v528_v8 = vsub.s32 1, %v1491_v1  ;;  %v521_v9 = vsub.s32 0, %v1491_v1  ;;  %v535_v11 = vsub.s32 2, %v1491_v1  ;;  %1175 = vmatpush3.bf16.msra.mxu0 %v1172_v5  ;;  %v549_v13 = vsub.s32 4, %v1491_v1  ;;  %v1573_v28 = vld [vmem:[%s1480_s24 + $0x38] sm:$0xff] }
  0x36   : > { %v1519_v12 = vld [vmem:[%s310_s14] sm:$0xff]  ;;  %1177 = vmatprep.subr.bf16.mxu0 %v1176_v10  ;;  %v542_v17 = vsub.s32 3, %v1491_v1  ;;  %v556_v22 = vsub.s32 5, %v1491_v1  ;;  %vm669_vm8 = vcmask 1047559   ;;  %vm672_vm9 = vcmask 64512   ;;  %s314_s14 = scalar_lea.vmem %s1743_s7, %s1107_s27 }
  0x37   : > { %v529_v14 = vrot.slane %v1519_v12, %v528_v8  ;;  %v522_v15 = vrot.slane %v1519_v12, %v521_v9  ;;  %v536_v16 = vrot.slane %v1519_v12, %v535_v11  ;;  %v550_v19 = vrot.slane %v1519_v12, %v549_v13  ;;  %v1109_v29 = vld [vmem:[%s1739_s3] ss:$0 sm:$0xff] }
  0x38   : > { %v543_v21 = vrot.slane %v1519_v12, %v542_v17  ;;  %v557_v25 = vrot.slane %v1519_v12, %v556_v22  ;;  %v1118_v42 = vld [vmem:[%s1740_s4] ss:$0 sm:$0xff]  ;;  %vm1352_vm10 = vmmov 0   ;;  %vm1020_vm11 = vcmask 15360  }
  0x39   : > { %531 = vbcast.lane.b32.xlu1 %v529_v14, 256  ;;  %524 = vbcast.lane.b32.xlu0 %v522_v15, 256  ;;  %v1350_v15 = vmov 0  }
  0x3a   : > { %1179 = vmatpush3.bf16.msra.mxu0 %v1176_v10  ;;  %1231 = vset.pattern.permute.xlu1 %v1350_v15 }
  0x3b   : > { %1232 = vset.pattern.permute.xlu0 %v1350_v15 }
  0x3d   : > { %1150 = vmatmul.mubr.msk.f32.vlgmr.msra.gmra.mrb[0].mxu0 %vm341_vm0, %v1533_v18  ;;  %538 = vbcast.lane.b32.xlu1 %v536_v16, 256  ;;  %v570_v16 = vsub.s32 7, %v1491_v1 }
  0x3e   : > { %1152 = vmatprep.mubr.msk.f32.mxu0 %vm341_vm0, %v1539_v20  ;;  %552 = vbcast.lane.b32.xlu0 %v550_v19, 256  ;;  %v563_v19 = vsub.s32 6, %v1491_v1 }
  0x41   : > { %1153 = vmatmul.mubr.msk.f32.gmra.mrb[2].mxu0 %vm341_vm0, %v1550_v23  ;;  %545 = vbcast.lane.b32.xlu1 %v543_v21, 256  ;;  %v571_v21 = vrot.slane %v1519_v12, %v570_v16 }
  0x42   : > { %1155 = vmatprep.mubr.msk.f32.mxu0 %vm341_vm0, %v1553_v24 }
  0x45   : > { %1156 = vmatmul.mubr.msk.f32.gmra.mrb[4].mxu0 %vm341_vm0, %v1563_v26  ;;  %559 = vbcast.lane.b32.xlu1 %v557_v25, 256  ;;  %v564_v25 = vrot.slane %v1519_v12, %v563_v19 }
  0x46   : > { %1158 = vmatprep.mubr.msk.f32.mxu0 %vm341_vm0, %v1566_v27 }
  0x49   : > { %1159 = vmatmul.mubr.msk.f32.gmra.mrb[6].mxu0 %vm341_vm0, %v1573_v28 }
 0x110   : > { %v1151_v30 = vpop.f32.mrb[0].mxu0 }
 0x111   : > { %v438_v31 = vadd.f32 %v1151_v30, %v1109_v29  ;;  %v432_v32 = vpop.f32.mrb[1].mxu0 }
 0x112   : > { %v433_v33 = vadd.f32 %v1109_v29, %v432_v32 }
 0x113   : > { %1233 = vtanh.f32 %v438_v31  ;;  %v525_v31 = vpop.permute.xlu0 %524 }
 0x114   : > { %1235 = vtanh.f32 %v433_v33  ;;  %v1154_v34 = vpop.f32.mrb[2].mxu0 }
 0x115   : > { %v448_v35 = vadd.f32 %v1154_v34, %v1109_v29  ;;  %v442_v36 = vpop.f32.mrb[3].mxu0 }
 0x116   : > { %v443_v37 = vadd.f32 %v1109_v29, %v442_v36 }
 0x117   : > { %1237 = vtanh.f32 %v448_v35  ;;  %v553_v33 = vpop.permute.xlu0 %552 }
 0x118   : > { %1239 = vtanh.f32 %v443_v37  ;;  %v1157_v38 = vpop.f32.mrb[4].mxu0 }
 0x119   : > { %v458_v39 = vadd.f32 %v1157_v38, %v1109_v29  ;;  %v452_v40 = vpop.f32.mrb[5].mxu0 }
 0x11a   : > { %v453_v41 = vadd.f32 %v1109_v29, %v452_v40 }
 0x11b   : > { %1241 = vtanh.f32 %v458_v39 }
 0x11c   : > { %1243 = vtanh.f32 %v453_v41  ;;  %v1160_v43 = vpop.f32.mrb[6].mxu0 }
 0x11d   : > { %v1234_v44 = vpop.eup %1233  ;;  %v468_v45 = vadd.f32 %v1160_v43, %v1109_v29  ;;  %v462_v46 = vpop.f32.mrb[7].mxu0 }
 0x11e   : > { %v1236_v47 = vpop.eup %1235  ;;  %v463_v48 = vadd.f32 %v1109_v29, %v462_v46  ;;  %v486_v49 = vmul.f32 %v1234_v44, %v1118_v42  ;;  %v532_v29 = vpop.permute.xlu1 %531 }
 0x11f   : > { %1245 = vtanh.f32 %v468_v45  ;;  %v485_v51 = vmul.f32 %v1236_v47, %v1118_v42 }
 0x120   : > { %1247 = vtanh.f32 %v463_v48  ;;  %v497_v50 = vsel %vm493_vm1, %v486_v49, 0.0 }
 0x121   : > { %v1238_v52 = vpop.eup %1237  ;;  %498 = vadd.xlane.f32.xlu0 %v497_v50  ;;  %v494_v56 = vsel %vm493_vm1, %v485_v51, 0.0 }
 0x122   : > { %v1240_v53 = vpop.eup %1239  ;;  %v488_v54 = vmul.f32 %v1238_v52, %v1118_v42  ;;  %v539_v30 = vpop.permute.xlu1 %538  ;;  %v624_v52 = vand.u32 127, %v519_v0 }
 0x123   : > { %v487_v57 = vmul.f32 %v1240_v53, %v1118_v42 }
 0x124   : > { %v503_v55 = vsel %vm493_vm1, %v488_v54, 0.0 }
 0x125   : > { %v1242_v58 = vpop.eup %1241  ;;  %504 = vadd.xlane.f32.xlu1 %v503_v55  ;;  %495 = vadd.xlane.f32.xlu0 %v494_v56  ;;  %v500_v61 = vsel %vm493_vm1, %v487_v57, 0.0  ;;  %v1622_v55 = vsub.s32 %v624_v52, %v1491_v1 }
 0x126   : > { %v1244_v59 = vpop.eup %1243  ;;  %v490_v62 = vmul.f32 %v1242_v58, %v1118_v42  ;;  %v546_v32 = vpop.permute.xlu1 %545 }
 0x127   : > { %v489_v60 = vmul.f32 %v1244_v59, %v1118_v42 }
 0x128   : > { %v509_v5 = vsel %vm493_vm1, %v490_v62, 0.0 }
 0x129   : > { %v1246_v63 = vpop.eup %1245  ;;  %501 = vadd.xlane.f32.xlu1 %v500_v61  ;;  %v506_v2 = vsel %vm493_vm1, %v489_v60, 0.0 }
 0x12a   : > { %v1248_v3 = vpop.eup %1247  ;;  %507 = vadd.xlane.f32.xlu0 %v506_v2  ;;  %v492_v6 = vmul.f32 %v1246_v63, %v1118_v42  ;;  %v560_v34 = vpop.permute.xlu1 %559 }
 0x12b   : > { %v491_v4 = vmul.f32 %v1248_v3, %v1118_v42 }
 0x12c   : > { %v515_v14 = vsel %vm493_vm1, %v492_v6, 0.0 }
 0x12d   : > { %510 = vadd.xlane.f32.xlu1 %v509_v5  ;;  %v512_v10 = vsel %vm493_vm1, %v491_v4, 0.0 }
 0x12e   : > { %513 = vadd.xlane.f32.xlu0 %v512_v10 }
 0x131   : > { %516 = vadd.xlane.f32.xlu1 %v515_v14 }
 0x142   : > { %573 = vbcast.lane.b32.xlu1 %v571_v21, 256 }
 0x144   : > { %566 = vbcast.lane.b32.xlu0 %v564_v25, 256 }
 0x1ae   : > { %v499_v35 = vpop.xlane.xlu0 %498 }
 0x1af   : > { %v1599_v36 = vadd.f32 %v532_v29, %v499_v35 }
 0x1b1   : > { %603 = vperm.xlu1 %1231, %v1599_v36  }
 0x1b2   : > { %v505_v37 = vpop.xlane.xlu1 %504  ;;  %v496_v38 = vpop.xlane.xlu0 %495 }
 0x1b3   : > { %v583_v39 = vadd.f32 %v525_v31, %v496_v38  ;;  %v1602_v41 = vadd.f32 %v546_v32, %v505_v37 }
 0x1b5   : > { %600 = vperm.xlu0 %1232, %v583_v39  }
 0x1b6   : > { %v502_v40 = vpop.xlane.xlu1 %501 }
 0x1b7   : > { %v1604_v12 = vadd.f32 %v539_v30, %v502_v40  ;;  %v508_v42 = vpop.xlane.xlu0 %507 }
 0x1b8   : > { %v1608_v44 = vadd.f32 %v553_v33, %v508_v42 }
 0x1b9   : > { %606 = vperm.xlu1 %1231, %v1604_v12   ;;  %609 = vperm.xlu0 %1232, %v1602_v41  }
 0x1ba   : > { %v511_v43 = vpop.xlane.xlu1 %510 }
 0x1bb   : > { %v1610_v45 = vadd.f32 %v560_v34, %v511_v43  ;;  %v514_v46 = vpop.xlane.xlu0 %513 }
 0x1bd   : > { %615 = vperm.xlu0 %1232, %v1610_v45   ;;  %612 = vperm.xlu1 %1231, %v1608_v44  }
 0x1be   : > { %v517_v47 = vpop.xlane.xlu1 %516 }
 0x1bf   : > { %v567_v48 = vpop.permute.xlu0 %566 }
 0x1c0   : > { %v1614_v49 = vadd.f32 %v567_v48, %v514_v46 }
 0x1c2   : > { %v574_v50 = vpop.permute.xlu1 %573  ;;  %618 = vperm.xlu1 %1231, %v1614_v49  }
 0x1c3   : > { %v1617_v51 = vadd.f32 %v574_v50, %v517_v47 }
 0x1c5   : > { %621 = vperm.xlu0 %1232, %v1617_v51  }
 0x230   : > { %v604_v53 = vpop.permute.xlu1 %603 }
 0x231   : > { %v632_v60 = vrot.slane %v604_v53, %v1622_v55 }
 0x234   : > { %v601_v54 = vpop.permute.xlu0 %600 }
 0x235   : > { %v628_v58 = vrot.slane %v601_v54, %v1622_v55 }
 0x237   : > { %v658_v62 = vsel %vm657_vm2, %v632_v60, %v628_v58 }
 0x238   : > { %v607_v56 = vpop.permute.xlu1 %606  ;;  %v610_v57 = vpop.permute.xlu0 %609 }
 0x239   : > { %v636_v59 = vrot.slane %v607_v56, %v1622_v55  ;;  %v640_v0 = vrot.slane %v610_v57, %v1622_v55 }
 0x23b   : > { %v660_v63 = vsel %vm659_vm3, %v636_v59, %v658_v62 }
 0x23c   : > { %v613_v61 = vpop.permute.xlu1 %612  ;;  %v616_v3 = vpop.permute.xlu0 %615  ;;  %v662_v4 = vsel %vm661_vm4, %v640_v0, %v660_v63 }
 0x23d   : > { %v644_v2 = vrot.slane %v613_v61, %v1622_v55  ;;  %v648_v5 = vrot.slane %v616_v3, %v1622_v55 }
 0x23f   : > { %v664_v10 = vsel %vm663_vm5, %v644_v2, %v662_v4 }
 0x240   : > { %v666_v21 = vsel %vm665_vm6, %v648_v5, %v664_v10 }
 0x241   : > { %v619_v6 = vpop.permute.xlu1 %618 }
 0x242   : > { %v652_v14 = vrot.slane %v619_v6, %v1622_v55 }
 0x244   : > { %v622_v15 = vpop.permute.xlu0 %621  ;;  %v668_v29 = vsel %vm667_vm7, %v652_v14, %v666_v21 }
 0x245   : > { %v656_v25 = vrot.slane %v622_v15, %v1622_v55 }
 0x247   : > { %v670_v30 = vsel %vm669_vm8, %v656_v25, %v668_v29 }
 0x248   : > { %v673_v31 = vsel %vm672_vm9, %v670_v30, -inf }
 0x249   : > { %674 = vmax.xlane.f32.xlu1 %v673_v31 }
 0x2d6   : > { %v675_v32 = vpop.xlane.xlu1 %674 }
 0x2d7   : > { %v680_v33 = vrot.slane %v675_v32, %v521_v9  ;;  %v684_v34 = vrot.slane %v675_v32, %v528_v8  ;;  %v688_v35 = vrot.slane %v675_v32, %v535_v11  ;;  %v692_v42 = vrot.slane %v675_v32, %v542_v17 }
 0x2d8   : > { %v696_v9 = vrot.slane %v675_v32, %v549_v13  ;;  %v700_v11 = vrot.slane %v675_v32, %v556_v22  ;;  %v704_v17 = vrot.slane %v675_v32, %v563_v19 }
 0x2d9   : > { %v717_v37 = vsub.f32 %v583_v39, %v680_v33  ;;  %v718_v38 = vsub.f32 %v1599_v36, %v684_v34  ;;  %v719_v43 = vsub.f32 %v1604_v12, %v688_v35  ;;  %v720_v47 = vsub.f32 %v1602_v41, %v692_v42  ;;  %v330_v34 = vld [vmem:[%s1741_s5] sm:$0xff]  ;;  %v331_v35 = vld [vmem:[%s1741_s5 + $0x8] sm:$0xff] }
 0x2da   : > { %v721_v36 = vsub.f32 %v1608_v44, %v696_v9  ;;  %v722_v12 = vsub.f32 %v1610_v45, %v700_v11  ;;  %v708_v41 = vrot.slane %v675_v32, %v570_v16  ;;  %v723_v22 = vsub.f32 %v1614_v49, %v704_v17 }
 0x2db   : > { %v725_v40 = vmul.f32 1.442695, %v717_v37  ;;  %v727_v46 = vmul.f32 1.442695, %v718_v38  ;;  %v729_v8 = vmul.f32 1.442695, %v719_v43  ;;  %v1181_v38 = vpack.c.bf16 %v331_v35, %v330_v34 }
 0x2dc   : > { %v731_v39 = vmul.f32 1.442695, %v720_v47  ;;  %v733_v13 = vmul.f32 1.442695, %v721_v36  ;;  %v735_v44 = vmul.f32 1.442695, %v722_v12  ;;  %v724_v53 = vsub.f32 %v1617_v51, %v708_v41 }
 0x2dd   : > { %1249 = vpow2.f32 %v725_v40  ;;  %v737_v54 = vmul.f32 1.442695, %v723_v22  ;;  %v1351_v37 = vmov 0.0|0.0   ;;  %v333_v40 = vld [vmem:[%s1741_s5 + $0x18] sm:$0xff]  ;;  %v1353_v42 = vmov 0.0  }
 0x2de   : > { %1251 = vpow2.f32 %v727_v46  ;;  %v739_v45 = vmul.f32 1.442695, %v724_v53  ;;  %1180 = vmatprep.subr.bf16.mxu1 %v1351_v37  ;;  %1169 = vmatprep.mubr.msk.f32.mxu1 %vm1352_vm10, %v1353_v42 }
 0x2df   : > { %1253 = vpow2.f32 %v729_v8  ;;  %1182 = vmatpush3.bf16.msra.mxu1 %v1181_v38 }
 0x2e0   : > { %1255 = vpow2.f32 %v731_v39  ;;  %1183 = vmatprep.subr.bf16.mxu1 %v1351_v37 }
 0x2e1   : > { %1257 = vpow2.f32 %v733_v13 }
 0x2e2   : > { %1259 = vpow2.f32 %v735_v44 }
 0x2e3   : > { %1261 = vpow2.f32 %v737_v54 }
 0x2e4   : > { %1263 = vpow2.f32 %v739_v45 }
 0x2e7   : > { %v1250_v48 = vpop.eup %1249 }
 0x2e8   : > { %750 = vperm.xlu0 %1232, %v1250_v48   ;;  %v1252_v50 = vpop.eup %1251 }
 0x2e9   : > { %v1254_v52 = vpop.eup %1253 }
 0x2ea   : > { %v1256_v19 = vpop.eup %1255 }
 0x2eb   : > { %v1258_v56 = vpop.eup %1257 }
 0x2ec   : > { %753 = vperm.xlu0 %1232, %v1252_v50   ;;  %v1260_v57 = vpop.eup %1259 }
 0x2ed   : > { %v1262_v1 = vpop.eup %1261 }
 0x2ee   : > { %v1264_v16 = vpop.eup %1263 }
 0x2f0   : > { %756 = vperm.xlu0 %1232, %v1254_v52  }
 0x2f4   : > { %759 = vperm.xlu0 %1232, %v1256_v19  }
 0x2f8   : > { %762 = vperm.xlu0 %1232, %v1258_v56  }
 0x2fc   : > { %765 = vperm.xlu0 %1232, %v1260_v57  }
 0x300   : > { %768 = vperm.xlu0 %1232, %v1262_v1  }
 0x304   : > { %771 = vperm.xlu0 %1232, %v1264_v16  }
 0x367   : > { %v751_v49 = vpop.permute.xlu0 %750 }
 0x368   : > { %v776_v63 = vrot.slane %v751_v49, %v1622_v55  ;;  %v824_v46 = vmul.f32 %v751_v49, %v1507_v7 }
 0x36a   : > { %v832_v36 = vsel %vm341_vm0, %v824_v46, 0.0 }
 0x36b   : > { %v754_v58 = vpop.permute.xlu0 %753  ;;  %v833_v13 = vrot.slane %v832_v36, 4 }
 0x36c   : > { %v780_v62 = vrot.slane %v754_v58, %v1622_v55  ;;  %v825_v9 = vmul.f32 %v754_v58, %v1533_v18 }
 0x36e   : > { %v805_v5 = vsel %vm657_vm2, %v780_v62, %v776_v63  ;;  %v839_v39 = vsel %vm341_vm0, %v825_v9, 0.0 }
 0x36f   : > { %v757_v59 = vpop.permute.xlu0 %756 }
 0x370   : > { %v784_v0 = vrot.slane %v757_v59, %v1622_v55  ;;  %v826_v47 = vmul.f32 %v757_v59, %v1539_v20  ;;  %v840_v20 = vrot.slane %v839_v39, 4 }
 0x372   : > { %v806_v10 = vsel %vm659_vm3, %v784_v0, %v805_v5  ;;  %v846_v48 = vsel %vm341_vm0, %v826_v47, 0.0  ;;  %v841_v53 = vadd.f32 %v840_v20, %v839_v39 }
 0x373   : > { %v760_v60 = vpop.permute.xlu0 %759  ;;  %v847_v50 = vrot.slane %v846_v48, 4 }
 0x374   : > { %v788_v2 = vrot.slane %v760_v60, %v1622_v55  ;;  %v827_v8 = vmul.f32 %v760_v60, %v1550_v23  ;;  %v842_v1 = vrot.slane %v841_v53, 2 }
 0x376   : > { %v807_v15 = vsel %vm661_vm4, %v788_v2, %v806_v10  ;;  %v853_v7 = vsel %vm341_vm0, %v827_v8, 0.0 }
 0x377   : > { %v763_v51 = vpop.permute.xlu0 %762  ;;  %v854_v41 = vrot.slane %v853_v7, 4 }
 0x378   : > { %v792_v3 = vrot.slane %v763_v51, %v1622_v55  ;;  %v828_v11 = vmul.f32 %v763_v51, %v1553_v24 }
 0x379   : > { %v855_v45 = vadd.f32 %v854_v41, %v853_v7 }
 0x37a   : > { %v808_v21 = vsel %vm663_vm5, %v792_v3, %v807_v15  ;;  %v860_v23 = vsel %vm341_vm0, %v828_v11, 0.0 }
 0x37b   : > { %v766_v61 = vpop.permute.xlu0 %765  ;;  %v861_v44 = vrot.slane %v860_v23, 4  ;;  %v856_v62 = vrot.slane %v855_v45, 2 }
 0x37c   : > { %v796_v6 = vrot.slane %v766_v61, %v1622_v55  ;;  %v829_v17 = vmul.f32 %v766_v61, %v1563_v26  ;;  %v834_v26 = vadd.f32 %v833_v13, %v832_v36 }
 0x37d   : > { %v862_v56 = vadd.f32 %v861_v44, %v860_v23 }
 0x37e   : > { %v809_v30 = vsel %vm665_vm6, %v796_v6, %v808_v21  ;;  %v867_v24 = vsel %vm341_vm0, %v829_v17, 0.0  ;;  %v835_v57 = vrot.slane %v834_v26, 2 }
 0x37f   : > { %v769_v4 = vpop.permute.xlu0 %768  ;;  %v868_v54 = vrot.slane %v867_v24, 4  ;;  %v863_v2 = vrot.slane %v862_v56, 2 }
 0x380   : > { %v800_v14 = vrot.slane %v769_v4, %v1622_v55  ;;  %v830_v12 = vmul.f32 %v769_v4, %v1566_v27  ;;  %v848_v27 = vadd.f32 %v847_v50, %v846_v48  ;;  %v843_v4 = vadd.f32 %v842_v1, %v841_v53 }
 0x381   : > { %v869_v49 = vadd.f32 %v868_v54, %v867_v24  ;;  %v836_v21 = vadd.f32 %v835_v57, %v834_v26 }
 0x382   : > { %v810_v31 = vsel %vm667_vm7, %v800_v14, %v809_v30  ;;  %v874_v22 = vsel %vm341_vm0, %v830_v12, 0.0  ;;  %v849_v16 = vrot.slane %v848_v27, 2  ;;  %v864_v30 = vadd.f32 %v863_v2, %v862_v56 }
 0x383   : > { %v772_v25 = vpop.permute.xlu0 %771  ;;  %v875_v19 = vrot.slane %v874_v22, 4  ;;  %v870_v5 = vrot.slane %v869_v49, 2  ;;  %v837_v35 = vrot.slane %v836_v21, 1 }
 0x384   : > { %v804_v29 = vrot.slane %v772_v25, %v1622_v55  ;;  %v332_v55 = vld [vmem:[%s1741_s5 + $0x10] sm:$0xff]  ;;  %v831_v18 = vmul.f32 %v772_v25, %v1573_v28  ;;  %v850_v10 = vadd.f32 %v849_v16, %v848_v27  ;;  %v857_v25 = vadd.f32 %v856_v62, %v855_v45  ;;  %v1119_v62 = vld [vmem:[%s1742_s6] ss:$0 sm:$0xff] }
 0x385   : > { %v1184_v43 = vpack.c.bf16 %v333_v40, %v332_v55  ;;  %v876_v59 = vadd.f32 %v875_v19, %v874_v22  ;;  %v865_v38 = vrot.slane %v864_v30, 1  ;;  %v838_v11 = vadd.f32 %v837_v35, %v836_v21 }
 0x386   : > { %v811_v32 = vsel %vm669_vm8, %v804_v29, %v810_v31  ;;  %v881_v52 = vsel %vm341_vm0, %v831_v18, 0.0  ;;  %v844_v31 = vrot.slane %v843_v4, 1  ;;  %v858_v55 = vrot.slane %v857_v25, 1 }
 0x387   : > { %v813_v33 = vsel %vm672_vm9, %v811_v32, 0.0  ;;  %1185 = vmatpush3.bf16.msra.mxu1 %v1184_v43  ;;  %v882_v28 = vrot.slane %v881_v52, 4  ;;  %v877_v14 = vrot.slane %v876_v59, 2  ;;  %v871_v32 = vadd.f32 %v870_v5, %v869_v49 }
 0x388   : > { %814 = vadd.xlane.f32.xlu0 %v813_v33  ;;  %v851_v33 = vrot.slane %v850_v10, 1  ;;  %v845_v42 = vadd.f32 %v844_v31, %v843_v4  ;;  %v859_v36 = vadd.f32 %v858_v55, %v857_v25  ;;  %v866_v12 = vadd.f32 %v865_v38, %v864_v30 }
 0x389   : > { %v883_v0 = vadd.f32 %v882_v28, %v881_v52  ;;  %v878_v34 = vadd.f32 %v877_v14, %v876_v59  ;;  %v872_v43 = vrot.slane %v871_v32, 1 }
 0x38a   : > { %v852_v9 = vadd.f32 %v851_v33, %v850_v10 }
 0x38b   : > { %v884_v29 = vrot.slane %v883_v0, 2  ;;  %v879_v47 = vrot.slane %v878_v34, 1  ;;  %v873_v13 = vadd.f32 %v872_v43, %v871_v32 }
 0x38d   : > { %v885_v37 = vadd.f32 %v884_v29, %v883_v0  ;;  %v880_v41 = vadd.f32 %v879_v47, %v878_v34 }
 0x38f   : > { %v886_v39 = vrot.slane %v885_v37, 1 }
 0x391   : > { %v887_v26 = vadd.f32 %v886_v39, %v885_v37 }
 0x415   : > { %v815_v58 = vpop.xlane.xlu0 %814 }
 0x416   : > { %v889_v60 = vrot.slane %v815_v58, 1  ;;  %v890_v51 = vrot.slane %v815_v58, 2  ;;  %v891_v61 = vrot.slane %v815_v58, 3  ;;  %v892_v63 = vrot.slane %v815_v58, 4 }
 0x417   : > { %1265 = vrcp.f32 %v815_v58  ;;  %v893_v3 = vrot.slane %v815_v58, 5  ;;  %v894_v6 = vrot.slane %v815_v58, 6  ;;  %v895_v15 = vrot.slane %v815_v58, 7 }
 0x418   : > { %1267 = vrcp.f32 %v889_v60 }
 0x419   : > { %1269 = vrcp.f32 %v890_v51 }
 0x41a   : > { %1271 = vrcp.f32 %v891_v61 }
 0x41b   : > { %1273 = vrcp.f32 %v892_v63 }
 0x41c   : > { %1275 = vrcp.f32 %v893_v3 }
 0x41d   : > { %1277 = vrcp.f32 %v894_v6 }
 0x41e   : > { %1279 = vrcp.f32 %v895_v15 }
 0x421   : > { %v1266_v40 = vpop.eup %1265 }
 0x422   : > { %v1268_v46 = vpop.eup %1267  ;;  %v905_v20 = vmul.f32 %v1266_v40, %v838_v11 }
 0x423   : > { %v1270_v8 = vpop.eup %1269  ;;  %v907_v48 = vmul.f32 %v1268_v46, %v845_v42 }
 0x424   : > { %v1272_v17 = vpop.eup %1271  ;;  %v909_v7 = vmul.f32 %v1270_v8, %v852_v9 }
 0x425   : > { %v1274_v18 = vpop.eup %1273  ;;  %v911_v50 = vmul.f32 %v1272_v17, %v859_v36  ;;  %v934_v23 = vrot.slane %v907_v48, 7 }
 0x426   : > { %v1276_v24 = vpop.eup %1275  ;;  %v913_v22 = vmul.f32 %v1274_v18, %v866_v12  ;;  %v936_v44 = vrot.slane %v909_v7, 6 }
 0x427   : > { %v1278_v52 = vpop.eup %1277  ;;  %v915_v53 = vmul.f32 %v1276_v24, %v873_v13  ;;  %v935_v27 = vsel %vm657_vm2, %v934_v23, %v905_v20  ;;  %v938_v54 = vrot.slane %v911_v50, 5 }
 0x428   : > { %v1280_v19 = vpop.eup %1279  ;;  %v917_v45 = vmul.f32 %v1278_v52, %v880_v41  ;;  %v937_v28 = vsel %vm659_vm3, %v936_v44, %v935_v27  ;;  %v940_v56 = vrot.slane %v913_v22, 4 }
 0x429   : > { %v919_v57 = vmul.f32 %v1280_v19, %v887_v26  ;;  %v939_v1 = vsel %vm661_vm4, %v938_v54, %v937_v28  ;;  %v942_v16 = vrot.slane %v915_v53, 3 }
 0x42a   : > { %v941_v49 = vsel %vm663_vm5, %v940_v56, %v939_v1  ;;  %v944_v58 = vrot.slane %v917_v45, 2 }
 0x42b   : > { %v943_v59 = vsel %vm665_vm6, %v942_v16, %v941_v49  ;;  %v946_v60 = vrot.slane %v919_v57, 1 }
 0x42c   : > { %v945_v51 = vsel %vm667_vm7, %v944_v58, %v943_v59 }
 0x42d   : > { %v947_v61 = vsel %vm669_vm8, %v946_v60, %v945_v51 }
 0x42e   : > { %1170 = vmatmul.mubr.msk.f32.vlgmr.msra.gmra.mrb[0].mxu1 %vm341_vm0, %v947_v61 }
 0x501   : > { %v1016_v0 = vpop.f32.mrb[0].mxu1 }
 0x502   : > { %v1017_v63 = vadd.f32 %v1119_v62, %v1016_v0  ;;  %v1171_v2 = vpop.f32.mrb[1].mxu1 }
 0x504   : > { %1021 = vst.msk [vmem:[%s314_s14] sm:$0xff] %vm1020_vm11, %v1017_v63 }
 0x505 PF: > { %p17_p7 = scmp.ge.s32.totalorder %s1416_s29, 4   ;;  %s1747_s24 = smov %s1337_s25 }
 0x506   : > { %s1748_s25 = smov %s1341_s26  ;;  %s1749_s26 = smov %s1426_s9 }
 0x507   : > { %s1750_s27 = smov %s1416_s29  ;;  %19 = sbr.rel (!%p17_p7) target bundleno = 3 (0x3), region = 91 }
 0x50e   :  { %1041 = vsyncpa [#allocation3], 1 }
 0x50f   :  { %1043 = vsyncpa [#allocation3 + $0x1], 1 }

</bundles_post_ra>
